<compile_context>
chip_gen: v6e
topology: v6e:2x2x1
jax: 0.10.0
libtpu: 0.0.40
codegen_flags: <defaults>
</compile_context>

<pallas_src>
import jax
import jax.numpy as jnp
from jax.experimental import pallas as pl
from jax.experimental.pallas import tpu as pltpu

_F_IN = 784          # 28 * 28
_H1 = 512
_H2 = 256


def _discriminator_kernel(x_ref, w1_ref, b1_ref, w2_ref, b2_ref,
                          w3_ref, b3_ref, o_ref):
    # f32 image tile -> bf16 in-kernel (VPU has slack; halves MXU input width).
    x = x_ref[...].astype(jnp.bfloat16)                       # (TB, 784)

    # Linear(784 -> 512) + LeakyReLU(0.2): bf16 MXU matmul, f32 accumulation.
    h1 = jnp.dot(x, w1_ref[...], preferred_element_type=jnp.float32) + b1_ref[...]
    h1 = jnp.maximum(h1, 0.2 * h1)                            # LeakyReLU(0.2)
    # Dropout(0.3): identity in eval mode.
    # TODO(synk): training-mode dropout (pltpu.prng_* mask + 1/(1-p) rescale).

    # Linear(512 -> 256) + LeakyReLU(0.2)
    h2 = jnp.dot(h1.astype(jnp.bfloat16), w2_ref[...],
                 preferred_element_type=jnp.float32) + b2_ref[...]
    h2 = jnp.maximum(h2, 0.2 * h2)
    # Dropout(0.3): identity in eval mode.

    # Linear(256 -> 1): N=1 matmul would waste a full MXU pass — do it as a
    # VPU multiply + lane reduction. w3 is a (1, 256) row, b3 a scalar in SMEM.
    logits = jnp.sum(h2 * w3_ref[...], axis=-1, keepdims=True) + b3_ref[0]

    # Sigmoid: clamp so exp never produces inf, then exp (EUP) + approx
    # reciprocal (EUP) -> no VPU divide.
    z = jnp.clip(logits, -30.0, 30.0)
    sig = pl.reciprocal(1.0 + jnp.exp(-z), approx=True)       # (TB, 1) f32

    o_ref[...] = sig.astype(o_ref.dtype)


def _round_up(n, m):
    return ((n + m - 1) // m) * m


def prepare_params(params):
    """f32 (in, out)-layout params -> kernel layout:
       w1 (784, 512) bf16, w2 (512, 256) bf16, b1/b2 f32 rows,
       w3 as a (1, 256) f32 row, b3 as a (1,) f32 scalar (SMEM)."""
    w1, b1, w2, b2, w3, b3 = params
    return (w1.astype(jnp.bfloat16),
            b1.reshape(1, _H1).astype(jnp.float32),
            w2.astype(jnp.bfloat16),
            b2.reshape(1, _H2).astype(jnp.float32),
            w3.reshape(1, _H2).astype(jnp.float32),            # (1, 256) row
            b3.reshape(1).astype(jnp.float32))


def discriminator_forward(img, kparams, *, tile_b=None):
    """img: (B, C, H, W) with C*H*W == 784 (NCHW, like PyTorch)."""
    w1, b1, w2, b2, w3, b3 = kparams
    B = img.shape[0]
    x = img.reshape(B, -1)                   # free view; dtype kept, cast in-kernel
    assert x.shape[1] == _F_IN

    if tile_b is None:
        # >= 2 grid steps when the batch allows (v7x: both TensorCores busy),
        # cap at 1024 rows (VMEM ~13 MiB with double buffering), and size to
        # cdiv(B, n_tiles) so ragged-tile waste is minimal.
        n_tiles = max(2, pl.cdiv(B, 1024)) if B > 8 else 1
        tile_b = pl.cdiv(B, n_tiles)
    # Block-shape legality: second-to-last block dim must be a multiple of 8
    # or equal the full batch dim.
    if tile_b < B:
        tile_b = _round_up(tile_b, 8)
    tile_b = min(tile_b, B)
    n_tiles = pl.cdiv(B, tile_b)

    const = lambda shape: pl.BlockSpec(shape, lambda i: (0, 0))

    out = pl.pallas_call(
        _discriminator_kernel,
        out_shape=jax.ShapeDtypeStruct((B, 1), jnp.float32),
        grid=(n_tiles,),
        in_specs=[
            pl.BlockSpec((tile_b, _F_IN), lambda i: (i, 0)),    # x: batch-tiled
            const((_F_IN, _H1)),                                # w1 (resident)
            const((1, _H1)),                                    # b1
            const((_H1, _H2)),                                  # w2 (resident)
            const((1, _H2)),                                    # b2
            const((1, _H2)),                                    # w3 row
            pl.BlockSpec(memory_space=pltpu.MemorySpace.SMEM),  # b3 scalar
        ],
        out_specs=pl.BlockSpec((tile_b, 1), lambda i: (i, 0)),
        compiler_params=pltpu.CompilerParams(
            dimension_semantics=("parallel",),
            vmem_limit_bytes=32 * 1024 * 1024,
        ),
    )(x, w1, b1, w2, b2, w3, b3)

    return out                                                  # (B, 1)


def init_params(key):
    """Deterministic init matching nn.Linear shapes; weights stored (in, out)."""
    ks = jax.random.split(key, 6)

    def linear(kw, kb, fan_in, fan_out):
        bound = 1.0 / float(fan_in) ** 0.5
        w = jax.random.uniform(kw, (fan_in, fan_out), jnp.float32, -bound, bound)
        b = jax.random.uniform(kb, (fan_out,), jnp.float32, -bound, bound)
        return w, b

    w1, b1 = linear(ks[0], ks[1], _F_IN, _H1)
    w2, b2 = linear(ks[2], ks[3], _H1, _H2)
    w3, b3 = linear(ks[4], ks[5], _H2, 1)
    return (w1, b1, w2, b2, w3, b3)


def _reference_forward(img, params):
    w1, b1, w2, b2, w3, b3 = params
    x = img.reshape(img.shape[0], -1)
    h1 = x @ w1 + b1
    h1 = jnp.where(h1 > 0, h1, 0.2 * h1)
    h2 = h1 @ w2 + b2
    h2 = jnp.where(h2 > 0, h2, 0.2 * h2)
    return jax.nn.sigmoid(h2 @ w3 + b3)


if __name__ == "__main__":
    key = jax.random.PRNGKey(0)
    k_img, k_param = jax.random.split(key)

    params = init_params(k_param)
    kparams = prepare_params(params)

    # MNIST-like NCHW input implied by Linear(784, ...): (B, 1, 28, 28).
    img = jax.random.normal(k_img, (2, 1, 28, 28), dtype=jnp.float32)
    out = jax.block_until_ready(discriminator_forward(img, kparams))
    ref = _reference_forward(img, params)
    assert out.shape == (2, 1)
    assert jnp.allclose(out, ref, atol=2e-2, rtol=2e-2), (
        f"max err {jnp.max(jnp.abs(out - ref))}")

    # Exercise the multi-tile grid + ragged (non-divisible) last-tile path.
    img2 = jax.random.normal(k_img, (37, 1, 28, 28), dtype=jnp.float32)
    out2 = jax.block_until_ready(
        discriminator_forward(img2, kparams, tile_b=16))
    ref2 = _reference_forward(img2, params)
    assert out2.shape == (37, 1)
    assert jnp.allclose(out2, ref2, atol=2e-2, rtol=2e-2), (
        f"max err {jnp.max(jnp.abs(out2 - ref2))}")

    # Default tile_b heuristic (>=2 grid steps for v7x megacore).
    out3 = jax.block_until_ready(discriminator_forward(img2, kparams))
    assert out3.shape == (37, 1)
    assert jnp.allclose(out3, ref2, atol=2e-2, rtol=2e-2), (
        f"max err {jnp.max(jnp.abs(out3 - ref2))}")

    print("KERNEL_OK")
</pallas_src>

<mosaic_0001>
module attributes {stable_mosaic.version = 11 : i64} {
  func.func @_discriminator_kernel(%arg0: i32, %arg1: memref<2x784xf32, #tpu.memory_space<vmem>>, %arg2: memref<784x512xbf16, #tpu.memory_space<vmem>>, %arg3: memref<1x512xf32, #tpu.memory_space<vmem>>, %arg4: memref<512x256xbf16, #tpu.memory_space<vmem>>, %arg5: memref<1x256xf32, #tpu.memory_space<vmem>>, %arg6: memref<1x256xf32, #tpu.memory_space<vmem>>, %arg7: memref<1xf32, #tpu.memory_space<smem>>, %arg8: memref<2x1xf32, #tpu.memory_space<vmem>>) attributes {dimension_semantics = [#tpu.dimension_semantics<parallel>], iteration_bounds = array<i64: 1>, scalar_prefetch = 0 : i64, scratch_operands = 0 : i64, tpu.core_type = #tpu.core_type<tc>, window_params = [{transform_indices = @transform_0, window_bounds = array<i64: 2, 784>}, {pipeline_mode = #tpu.pipeline_mode<synchronous>, transform_indices = @transform_1, window_bounds = array<i64: 784, 512>}, {pipeline_mode = #tpu.pipeline_mode<synchronous>, transform_indices = @transform_2, window_bounds = array<i64: 1, 512>}, {pipeline_mode = #tpu.pipeline_mode<synchronous>, transform_indices = @transform_3, window_bounds = array<i64: 512, 256>}, {pipeline_mode = #tpu.pipeline_mode<synchronous>, transform_indices = @transform_4, window_bounds = array<i64: 1, 256>}, {pipeline_mode = #tpu.pipeline_mode<synchronous>, transform_indices = @transform_5, window_bounds = array<i64: 1, 256>}, {transform_indices = @transform_6, window_bounds = array<i64: 1>}, {transform_indices = @transform_7, window_bounds = array<i64: 2, 1>}]} {
    %c0 = arith.constant 0 : index
    %c0_0 = arith.constant 0 : index
    %0 = vector.load %arg1[%c0, %c0_0] : memref<2x784xf32, #tpu.memory_space<vmem>>, vector<2x784xf32>
    %1 = arith.truncf %0 : vector<2x784xf32> to vector<2x784xbf16>
    %c0_1 = arith.constant 0 : index
    %c0_2 = arith.constant 0 : index
    %2 = vector.load %arg2[%c0_1, %c0_2] : memref<784x512xbf16, #tpu.memory_space<vmem>>, vector<784x512xbf16>
    %cst = arith.constant dense<0.000000e+00> : vector<2x512xf32>
    %3 = tpu.matmul %1, %2, %cst {dimension_numbers = #tpu.dot_dimension_numbers<[1], [0], [0], [1], [0, 0, 1, 1], [], []>} : vector<2x784xbf16>, vector<784x512xbf16>, vector<2x512xf32> -> vector<2x512xf32>
    %c0_3 = arith.constant 0 : index
    %c0_4 = arith.constant 0 : index
    %4 = vector.load %arg3[%c0_3, %c0_4] : memref<1x512xf32, #tpu.memory_space<vmem>>, vector<1x512xf32>
    %5 = vector.broadcast %4 : vector<1x512xf32> to vector<2x512xf32>
    %6 = arith.addf %3, %5 : vector<2x512xf32>
    %cst_5 = arith.constant 2.000000e-01 : f32
    %7 = vector.broadcast %cst_5 : f32 to vector<2x512xf32>
    %8 = arith.mulf %7, %6 : vector<2x512xf32>
    %9 = arith.maximumf %6, %8 : vector<2x512xf32>
    %10 = arith.truncf %9 : vector<2x512xf32> to vector<2x512xbf16>
    %c0_6 = arith.constant 0 : index
    %c0_7 = arith.constant 0 : index
    %11 = vector.load %arg4[%c0_6, %c0_7] : memref<512x256xbf16, #tpu.memory_space<vmem>>, vector<512x256xbf16>
    %cst_8 = arith.constant dense<0.000000e+00> : vector<2x256xf32>
    %12 = tpu.matmul %10, %11, %cst_8 {dimension_numbers = #tpu.dot_dimension_numbers<[1], [0], [0], [1], [0, 0, 1, 1], [], []>} : vector<2x512xbf16>, vector<512x256xbf16>, vector<2x256xf32> -> vector<2x256xf32>
    %c0_9 = arith.constant 0 : index
    %c0_10 = arith.constant 0 : index
    %13 = vector.load %arg5[%c0_9, %c0_10] : memref<1x256xf32, #tpu.memory_space<vmem>>, vector<1x256xf32>
    %14 = vector.broadcast %13 : vector<1x256xf32> to vector<2x256xf32>
    %15 = arith.addf %12, %14 : vector<2x256xf32>
    %cst_11 = arith.constant 2.000000e-01 : f32
    %16 = vector.broadcast %cst_11 : f32 to vector<2x256xf32>
    %17 = arith.mulf %16, %15 : vector<2x256xf32>
    %18 = arith.maximumf %15, %17 : vector<2x256xf32>
    %c0_12 = arith.constant 0 : index
    %c0_13 = arith.constant 0 : index
    %19 = vector.load %arg6[%c0_12, %c0_13] : memref<1x256xf32, #tpu.memory_space<vmem>>, vector<1x256xf32>
    %20 = vector.broadcast %19 : vector<1x256xf32> to vector<2x256xf32>
    %21 = arith.mulf %18, %20 : vector<2x256xf32>
    %cst_14 = arith.constant dense<0.000000e+00> : vector<2xf32>
    %22 = vector.multi_reduction <add>, %21, %cst_14 [1] : vector<2x256xf32> to vector<2xf32>
    %23 = vector.shape_cast %22 : vector<2xf32> to vector<2x1xf32>
    %c0_15 = arith.constant 0 : index
    %24 = memref.load %arg7[%c0_15] : memref<1xf32, #tpu.memory_space<smem>>
    %25 = vector.broadcast %24 : f32 to vector<2x1xf32>
    %26 = arith.addf %23, %25 : vector<2x1xf32>
    %cst_16 = arith.constant -3.000000e+01 : f32
    %cst_17 = arith.constant 3.000000e+01 : f32
    %27 = vector.broadcast %cst_16 : f32 to vector<2x1xf32>
    %28 = arith.maximumf %27, %26 : vector<2x1xf32>
    %29 = vector.broadcast %cst_17 : f32 to vector<2x1xf32>
    %30 = arith.minimumf %29, %28 : vector<2x1xf32>
    %cst_18 = arith.constant 0.000000e+00 : f32
    %31 = vector.broadcast %cst_18 : f32 to vector<2x1xf32>
    %32 = arith.subf %31, %30 : vector<2x1xf32>
    %33 = math.exp %32 : vector<2x1xf32>
    %cst_19 = arith.constant 1.000000e+00 : f32
    %34 = vector.broadcast %cst_19 : f32 to vector<2x1xf32>
    %35 = arith.addf %34, %33 : vector<2x1xf32>
    %36 = tpu.reciprocal %35 {approx = true} : vector<2x1xf32> -> vector<2x1xf32>
    %c0_20 = arith.constant 0 : index
    %c0_21 = arith.constant 0 : index
    %37 = vector.load %arg8[%c0_20, %c0_21] : memref<2x1xf32, #tpu.memory_space<vmem>>, vector<2x1xf32>
    tpu.vector_store %arg8[%c0_20, %c0_21], %36 {strides = array<i32>} : memref<2x1xf32, #tpu.memory_space<vmem>>, vector<2x1xf32>,
    return
  }
  func.func @transform_0(%arg0: i32) -> (i32, i32) {
    %c0_i32 = arith.constant 0 : i32
    %c0_i32_0 = arith.constant 0 : i32
    return %arg0, %c0_i32 : i32, i32
  }
  func.func @transform_1(%arg0: i32) -> (i32, i32) {
    %c0_i32 = arith.constant 0 : i32
    %c0_i32_0 = arith.constant 0 : i32
    %c0_i32_1 = arith.constant 0 : i32
    return %c0_i32, %c0_i32_0 : i32, i32
  }
  func.func @transform_2(%arg0: i32) -> (i32, i32) {
    %c0_i32 = arith.constant 0 : i32
    %c0_i32_0 = arith.constant 0 : i32
    %c0_i32_1 = arith.constant 0 : i32
    return %c0_i32, %c0_i32_0 : i32, i32
  }
  func.func @transform_3(%arg0: i32) -> (i32, i32) {
    %c0_i32 = arith.constant 0 : i32
    %c0_i32_0 = arith.constant 0 : i32
    %c0_i32_1 = arith.constant 0 : i32
    return %c0_i32, %c0_i32_0 : i32, i32
  }
  func.func @transform_4(%arg0: i32) -> (i32, i32) {
    %c0_i32 = arith.constant 0 : i32
    %c0_i32_0 = arith.constant 0 : i32
    %c0_i32_1 = arith.constant 0 : i32
    return %c0_i32, %c0_i32_0 : i32, i32
  }
  func.func @transform_5(%arg0: i32) -> (i32, i32) {
    %c0_i32 = arith.constant 0 : i32
    %c0_i32_0 = arith.constant 0 : i32
    %c0_i32_1 = arith.constant 0 : i32
    return %c0_i32, %c0_i32_0 : i32, i32
  }
  func.func @transform_6(%arg0: i32) -> i32 {
    %c0_i32 = arith.constant 0 : i32
    %c0_i32_0 = arith.constant 0 : i32
    return %c0_i32 : i32
  }
  func.func @transform_7(%arg0: i32) -> (i32, i32) {
    %c0_i32 = arith.constant 0 : i32
    %c0_i32_0 = arith.constant 0 : i32
    return %arg0, %c0_i32 : i32, i32
  }
}

</mosaic_0001>

<bundles_post_ra>
// kernel: tpu_custom_call.1
= control target key start
LH: loop header
LB: loop body
LE: loop exit
PB: predicated region body
PF: predicated region fallthrough
CT: control target
= control target key end

     0   :  { %13 = vsyncpa [#allocation4], 0  ;;  %s3046_s0 = inlined_call_operand.hbm [shape: f32[2,784], index: 0, kind: input, shape index: {}]   ;;  %s3047_s1 = inlined_call_operand.hbm [shape: bf16[784,512], index: 1, kind: input, shape index: {}]   ;;  %s3048_s2 = inlined_call_operand.vmem [shape: f32[1,512], index: 2, kind: input, shape index: {}]   ;;  %s3049_s3 = inlined_call_operand.hbm [shape: bf16[512,256], index: 3, kind: input, shape index: {}]   ;;  %s3050_s4 = inlined_call_operand.vmem [shape: f32[1,256], index: 4, kind: input, shape index: {}]   ;;  %s3051_s5 = inlined_call_operand.vmem [shape: f32[1,256], index: 5, kind: input, shape index: {}]   ;;  %s3052_s6 = inlined_call_operand.<no memory space> [shape: f32[1], index: 6, kind: input, shape index: {}]   ;;  %s3053_s7 = inlined_call_operand.vmem [shape: f32[2,1], index: 7, kind: output, shape index: {}]  }
   0x1   :  { %14 = vsyncpa [#allocation6], 0  ;;  %s2912_s24 = smov [#allocation5]  }
   0x2   :  { %s30_s25 = sshll.u32 %s2912_s24, 4  ;;  %s31_s25 = int_to_ptr.vmem [resolvable:$true] %s30_s25 }
   0x3   :  { %s2856_s26 = scalar_lea.vmem %s31_s25, 25088  ;;  %p2861_p1 = scmp.lt.s32.totalorder %s31_s25, %s31_s25 }
   0x4   :  { %p2857_p0 = scmp.ne.s32.totalorder %s31_s25, %s2856_s26  ;;  %p2862_p2 = scmp.lt.s32.totalorder %s2856_s26, %s2856_s26 }
   0x6   :  { %p2863_p3 = por %p2862_p2, %p2861_p1 }
   0x8   :  { %p2864_p4 = pnand %p2863_p3, %p2857_p0 }
   0xa   :  { %2867 = shalt.err (!%p2864_p4)
}
   0xb   :  { %s2913_s27 = smov 256   ;;  %s2914_s28 = smov 16  }
   0xc   :  { %36 = dma.hbm_to_vmem [thread:$0]  %s3047_s1, 25088, %s31_s25, [#allocation6], %s2913_s27, %s2913_s27, %s2914_s28  }
   0xd   :  { %s2915_s8 = smov [#allocation3]   ;;  %s2916_s10 = smov [#allocation7]  }
   0xe   :  { %s21_s9 = sshll.u32 %s2915_s8, 4  ;;  %s44_s11 = sshll.u32 %s2916_s10, 4  ;;  %s22_s9 = int_to_ptr.vmem [resolvable:$true] %s21_s9  ;;  %s45_s11 = int_to_ptr.vmem [resolvable:$true] %s44_s11 }
   0xf   :  { %s2876_s12 = scalar_lea.vmem %s22_s9, 224  ;;  %p2881_p6 = scmp.lt.s32.totalorder %s22_s9, %s22_s9 }
  0x10   :  { %p2877_p5 = scmp.ne.s32.totalorder %s22_s9, %s2876_s12  ;;  %p2882_p7 = scmp.lt.s32.totalorder %s2876_s12, %s2876_s12 }
  0x12   :  { %p2883_p8 = por %p2882_p7, %p2881_p6 }
  0x14   :  { %p2884_p9 = pnand %p2883_p8, %p2877_p5 }
  0x16   :  { %2887 = shalt.err (!%p2884_p9)
}
  0x17   :  { %24 = dma.hbm_to_vmem [thread:$0]  %s3046_s0, 224, %s22_s9, [#allocation4]  }
  0x18   :  { %s2896_s15 = scalar_lea.vmem %s45_s11, 8192  ;;  %p2901_p11 = scmp.lt.s32.totalorder %s45_s11, %s45_s11 }
  0x19   :  { %p2897_p10 = scmp.ne.s32.totalorder %s45_s11, %s2896_s15  ;;  %p2902_p12 = scmp.lt.s32.totalorder %s2896_s15, %s2896_s15 }
  0x1b   :  { %p2903_p13 = por %p2902_p12, %p2901_p11 }
  0x1d   :  { %p2904_p0 = pnand %p2903_p13, %p2897_p10 }
  0x1f   :  { %2907 = shalt.err (!%p2904_p0)
}
  0x20   :  { %s2917_s1 = smov 128   ;;  %s2918_s16 = smov 8  }
  0x21   :  { %50 = dma.hbm_to_vmem [thread:$0]  %s3049_s3, 8192, %s45_s11, [#allocation6], %s2917_s1, %s2917_s1, %s2918_s16  }
  0x22   :  { %2908 = dma.done.wait [#allocation4], 224  }
  0x23   :  { %2909 = vsyncadd [#allocation4], 4294967072 }
  0x24   :  { %2910 = dma.done.wait [#allocation6], 33280  }
  0x25   :  { %2911 = vsyncadd [#allocation6], 4294934016  ;;  %v2452_v0 = vld [vmem:[#allocation5 + $0xe4] ss:$16 sps:$4 sm:$0xff]   ;;  %v2456_v2 = vld [vmem:[#allocation5 + $0xe0] ss:$16 sps:$4 sm:$0xff]   ;;  %v75_v38 = vlaneseq }
  0x26   :  { %v2454_v1 = vld [vmem:[#allocation5 + $0x2e4] ss:$16 sps:$4 sm:$0xff]   ;;  %1320 = vmatprep.subr.bf16.mxu0 %v2452_v0  ;;  %v2457_v3 = vld [vmem:[#allocation5 + $0x2e0] ss:$16 sps:$4 sm:$0xff]   ;;  %v2919_v36 = vmov 1983009808  }
  0x27   :  { %1361 = vmatprep.subr.bf16.mxu1 %v2454_v1  ;;  %v2458_v4 = vld [vmem:[#allocation5 + $0xc4] ss:$16 sps:$4 sm:$0xff]   ;;  %1321 = vmatpush1.bf16.msra.mxu0 %v2456_v2  ;;  %v2462_v6 = vld [vmem:[#allocation5 + $0xc0] ss:$16 sps:$4 sm:$0xff]   ;;  %v73_v37 = vunpack.c.l.s4 %v2919_v36  ;;  %v2970_v43 = vshrl.u32 %v75_v38, 7  ;;  %vm1316_vm0 = vcmask 130048  }
  0x28   :  { %1362 = vmatpush1.bf16.msra.mxu1 %v2457_v3  ;;  %v2460_v5 = vld [vmem:[#allocation5 + $0x2c4] ss:$16 sps:$4 sm:$0xff]   ;;  %1322 = vmatprep.subr.bf16.mxu0 %v2458_v4  ;;  %v2463_v7 = vld [vmem:[#allocation5 + $0x2c0] ss:$16 sps:$4 sm:$0xff]   ;;  %v2565_v36 = vld [vmem:[#allocation5 + $0xc8] ss:$16 sps:$4 sm:$0xff]  }
  0x29   :  { %1363 = vmatprep.subr.bf16.mxu1 %v2460_v5  ;;  %v2464_v8 = vld [vmem:[#allocation5 + $0xa4] ss:$16 sps:$4 sm:$0xff]   ;;  %v2468_v10 = vld [vmem:[#allocation5 + $0xa0] ss:$16 sps:$4 sm:$0xff]   ;;  %v74_v42 = vunpack.c.0.s8 %v73_v37  ;;  %v2573_v38 = vld [vmem:[#allocation5 + $0xac] ss:$16 sps:$4 sm:$0xff]  }
  0x2a   :  { %v2466_v9 = vld [vmem:[#allocation5 + $0x2a4] ss:$16 sps:$4 sm:$0xff]   ;;  %v2469_v11 = vld [vmem:[#allocation5 + $0x2a0] ss:$16 sps:$4 sm:$0xff]   ;;  %vm2156_vm1 = vcmask 1041408   ;;  %vm2172_vm2 = vcmask 1024  }
  0x2b   :  { %1323 = vmatpush1.bf16.msra.mxu0 %v2462_v6  ;;  %v2470_v12 = vld [vmem:[#allocation5 + $0x84] ss:$16 sps:$4 sm:$0xff]   ;;  %v2474_v14 = vld [vmem:[#allocation5 + $0x80] ss:$16 sps:$4 sm:$0xff]   ;;  %v2973_v49 = vsub.s32 %v74_v42, %v2970_v43  ;;  %v2579_v42 = vld [vmem:[#allocation5 + $0x8c] ss:$16 sps:$4 sm:$0xff]  }
  0x2c   :  { %1364 = vmatpush1.bf16.msra.mxu1 %v2463_v7  ;;  %1324 = vmatprep.subr.bf16.mxu0 %v2464_v8  ;;  %v2472_v13 = vld [vmem:[#allocation5 + $0x284] ss:$16 sps:$4 sm:$0xff]   ;;  %v2475_v15 = vld [vmem:[#allocation5 + $0x280] ss:$16 sps:$4 sm:$0xff]  }
  0x2d   :  { %1365 = vmatprep.subr.bf16.mxu1 %v2466_v9  ;;  %v2476_v16 = vld [vmem:[#allocation5 + $0x64] ss:$16 sps:$4 sm:$0xff]   ;;  %v2480_v18 = vld [vmem:[#allocation5 + $0x60] ss:$16 sps:$4 sm:$0xff]  }
  0x2e   :  { %v2478_v17 = vld [vmem:[#allocation5 + $0x264] ss:$16 sps:$4 sm:$0xff]   ;;  %v2481_v19 = vld [vmem:[#allocation5 + $0x260] ss:$16 sps:$4 sm:$0xff]  }
  0x2f   :  { %1325 = vmatpush1.bf16.msra.mxu0 %v2468_v10  ;;  %v2482_v20 = vld [vmem:[#allocation5 + $0x44] ss:$16 sps:$4 sm:$0xff]   ;;  %v2486_v22 = vld [vmem:[#allocation5 + $0x40] ss:$16 sps:$4 sm:$0xff]  }
  0x30   :  { %1366 = vmatpush1.bf16.msra.mxu1 %v2469_v11  ;;  %1326 = vmatprep.subr.bf16.mxu0 %v2470_v12  ;;  %v2484_v21 = vld [vmem:[#allocation5 + $0x244] ss:$16 sps:$4 sm:$0xff]   ;;  %v2487_v23 = vld [vmem:[#allocation5 + $0x240] ss:$16 sps:$4 sm:$0xff]   ;;  %v68_v12 = vld [vmem:[#allocation3 + $0x8] sm:$0x3f] }
  0x31   :  { %1367 = vmatprep.subr.bf16.mxu1 %v2472_v13  ;;  %v2488_v24 = vld [vmem:[#allocation5 + $0x24] ss:$16 sps:$4 sm:$0xff]   ;;  %v2492_v26 = vld [vmem:[#allocation5 + $0x20] ss:$16 sps:$4 sm:$0xff]   ;;  %v2984_v13 = vrot.slane %v68_v12, %v2973_v49 }
  0x32   :  { %v2490_v25 = vld [vmem:[#allocation5 + $0x224] ss:$16 sps:$4 sm:$0xff]   ;;  %v2493_v27 = vld [vmem:[#allocation5 + $0x220] ss:$16 sps:$4 sm:$0xff]  }
  0x33   :  { %1327 = vmatpush1.bf16.msra.mxu0 %v2474_v14  ;;  %v2494_v28 = vld [vmem:[#allocation5 + $0x4] ss:$16 sps:$4 sm:$0xff]   ;;  %v2498_v30 = vld [vmem:[#allocation5] ss:$16 sps:$4 sm:$0xff]  }
  0x34   :  { %1368 = vmatpush1.bf16.msra.mxu1 %v2475_v15  ;;  %1328 = vmatprep.subr.bf16.mxu0 %v2476_v16  ;;  %v2496_v29 = vld [vmem:[#allocation5 + $0x204] ss:$16 sps:$4 sm:$0xff]   ;;  %v2499_v31 = vld [vmem:[#allocation5 + $0x200] ss:$16 sps:$4 sm:$0xff]  }
  0x35   :  { %1369 = vmatprep.subr.bf16.mxu1 %v2478_v17  ;;  %v2500_v32 = vld [vmem:[#allocation5 + $0x1e4] ss:$16 sps:$4 sm:$0xff]   ;;  %v2504_v34 = vld [vmem:[#allocation5 + $0x1e0] ss:$16 sps:$4 sm:$0xff]  }
  0x36   :  { %v2502_v33 = vld [vmem:[#allocation5 + $0x3e4] ss:$16 sps:$4 sm:$0xff]   ;;  %v2505_v35 = vld [vmem:[#allocation5 + $0x3e0] ss:$16 sps:$4 sm:$0xff]  }
  0x37   :  { %1329 = vmatpush1.bf16.msra.mxu0 %v2480_v18  ;;  %v2506_v39 = vld [vmem:[#allocation5 + $0x1c4] ss:$16 sps:$4 sm:$0xff]   ;;  %v2510_v41 = vld [vmem:[#allocation5 + $0x1c0] ss:$16 sps:$4 sm:$0xff]   ;;  %v103_v18 = vcombine.high %v2984_v13, %v2984_v13 }
  0x38   :  { %1370 = vmatpush1.bf16.msra.mxu1 %v2481_v19  ;;  %1330 = vmatprep.subr.bf16.mxu0 %v2482_v20  ;;  %v2508_v40 = vld [vmem:[#allocation5 + $0x3c4] ss:$16 sps:$4 sm:$0xff]   ;;  %v2511_v44 = vld [vmem:[#allocation5 + $0x3c0] ss:$16 sps:$4 sm:$0xff]  }
  0x39   :  { %1371 = vmatprep.subr.bf16.mxu1 %v2484_v21  ;;  %v2512_v45 = vld [vmem:[#allocation5 + $0x1a4] ss:$16 sps:$4 sm:$0xff]   ;;  %v2516_v47 = vld [vmem:[#allocation5 + $0x1a0] ss:$16 sps:$4 sm:$0xff]   ;;  %v88_v21 = vcombine.high %v68_v12, %v68_v12  ;;  %v2627_v12 = vld [vmem:[#allocation5 + $0x18c] ss:$16 sps:$4 sm:$0xff]  }
  0x3a   :  { %v2514_v46 = vld [vmem:[#allocation5 + $0x3a4] ss:$16 sps:$4 sm:$0xff]   ;;  %v2517_v48 = vld [vmem:[#allocation5 + $0x3a0] ss:$16 sps:$4 sm:$0xff]  }
  0x3b   :  { %1331 = vmatpush1.bf16.msra.mxu0 %v2486_v22  ;;  %v2518_v50 = vld [vmem:[#allocation5 + $0x184] ss:$16 sps:$4 sm:$0xff]   ;;  %v2522_v53 = vld [vmem:[#allocation5 + $0x180] ss:$16 sps:$4 sm:$0xff]  }
  0x3c   :  { %1372 = vmatpush1.bf16.msra.mxu1 %v2487_v23  ;;  %1332 = vmatprep.subr.bf16.mxu0 %v2488_v24  ;;  %v2520_v51 = vld [vmem:[#allocation5 + $0x384] ss:$16 sps:$4 sm:$0xff]   ;;  %v2523_v56 = vld [vmem:[#allocation5 + $0x380] ss:$16 sps:$4 sm:$0xff]  }
  0x3d   :  { %1373 = vmatprep.subr.bf16.mxu1 %v2490_v25  ;;  %v67_v52 = vld [vmem:[#allocation3] sm:$0xff]  ;;  %v2560_v25 = vld [vmem:[#allocation5 + $0xec] ss:$16 sps:$4 sm:$0xff]  }
  0x3e   :  { %v78_v54 = vrot.slane %v67_v52, %v2973_v49  ;;  %v71_v55 = vcombine.high %v67_v52, %v67_v52  ;;  %v2524_v57 = vld [vmem:[#allocation5 + $0x164] ss:$16 sps:$4 sm:$0xff]   ;;  %v2528_v61 = vld [vmem:[#allocation5 + $0x160] ss:$16 sps:$4 sm:$0xff]  }
  0x3f   :  { %1333 = vmatpush1.bf16.msra.mxu0 %v2492_v26  ;;  %v2526_v58 = vld [vmem:[#allocation5 + $0x364] ss:$16 sps:$4 sm:$0xff]   ;;  %v2529_v0 = vld [vmem:[#allocation5 + $0x360] ss:$16 sps:$4 sm:$0xff]   ;;  %v2992_v26 = vpack.c.bf16 %v103_v18, %v103_v18 }
  0x40   :  { %1374 = vmatpush1.bf16.msra.mxu1 %v2493_v27  ;;  %1334 = vmatprep.subr.bf16.mxu0 %v2494_v28  ;;  %v86_v59 = vcombine.high %v78_v54, %v78_v54  ;;  %v85_v60 = vrot.slane %v71_v55, %v2973_v49  ;;  %v2530_v1 = vld [vmem:[#allocation5 + $0x144] ss:$16 sps:$4 sm:$0xff]   ;;  %v2534_v4 = vld [vmem:[#allocation5 + $0x140] ss:$16 sps:$4 sm:$0xff]   ;;  %v2988_v19 = vpack.c.bf16 %v78_v54, %v78_v54  ;;  %v2597_v55 = vld [vmem:[#allocation5 + $0x2c] ss:$16 sps:$4 sm:$0xff]  }
  0x41   :  { %1375 = vmatprep.subr.bf16.mxu1 %v2496_v29  ;;  %v2532_v2 = vld [vmem:[#allocation5 + $0x344] ss:$16 sps:$4 sm:$0xff]   ;;  %v2535_v5 = vld [vmem:[#allocation5 + $0x340] ss:$16 sps:$4 sm:$0xff]   ;;  %v102_v27 = vrot.slane %v88_v21, %v2973_v49  ;;  %v2920_v29 = vmov 0  }
  0x42   :  { %v2977_v62 = vpack.c.bf16 %v86_v59, %v86_v59  ;;  %v87_v63 = vcombine.high %v85_v60, %v85_v60  ;;  %v2536_v6 = vld [vmem:[#allocation5 + $0x124] ss:$16 sps:$4 sm:$0xff]   ;;  %v2540_v8 = vld [vmem:[#allocation5 + $0x120] ss:$16 sps:$4 sm:$0xff]   ;;  %v2990_v20 = vpack.c.bf16 %v85_v60, %v85_v60  ;;  %v2583_v49 = vld [vmem:[#allocation5 + $0x68] ss:$16 sps:$4 sm:$0xff]  }
  0x43   :  { %1335 = vmatpush1.bf16.msra.mxu0 %v2498_v30  ;;  %v2538_v7 = vld [vmem:[#allocation5 + $0x324] ss:$16 sps:$4 sm:$0xff]   ;;  %v2541_v9 = vld [vmem:[#allocation5 + $0x320] ss:$16 sps:$4 sm:$0xff]   ;;  %v2603_v59 = vld [vmem:[#allocation5 + $0xc] ss:$16 sps:$4 sm:$0xff]  }
  0x44   :  { %1376 = vmatpush1.bf16.msra.mxu1 %v2499_v31  ;;  %1336 = vmatprep.subr.bf16.mxu0 %v2500_v32  ;;  %v2979_v3 = vpack.c.bf16 %v87_v63, %v87_v63  ;;  %v2542_v10 = vld [vmem:[#allocation5 + $0x104] ss:$16 sps:$4 sm:$0xff]   ;;  %v2546_v14 = vld [vmem:[#allocation5 + $0x100] ss:$16 sps:$4 sm:$0xff]   ;;  %v2999_v31 = vpack.c.bf16 %v102_v27, %v102_v27  ;;  %v2558_v32 = vld [vmem:[#allocation5 + $0xe8] ss:$16 sps:$4 sm:$0xff]  }
  0x45   :  { %1377 = vmatprep.subr.bf16.mxu1 %v2502_v33  ;;  %1352 = vmatprep.mubr.bf16.mxu0 %v2977_v62  ;;  %v2544_v11 = vld [vmem:[#allocation5 + $0x304] ss:$16 sps:$4 sm:$0xff]   ;;  %v2547_v15 = vld [vmem:[#allocation5 + $0x300] ss:$16 sps:$4 sm:$0xff]   ;;  %v2609_v63 = vld [vmem:[#allocation5 + $0x1ec] ss:$16 sps:$4 sm:$0xff]  }
  0x46   :  { %1393 = vmatprep.mubr.bf16.mxu1 %v2979_v3  ;;  %v2551_v16 = vld [vmem:[#allocation5 + $0x4e4] ss:$16 sps:$4 sm:$0xff]   ;;  %v2549_v22 = vld [vmem:[#allocation5 + $0x4e0] ss:$16 sps:$4 sm:$0xff]   ;;  %v2631_v21 = vld [vmem:[#allocation5 + $0x168] ss:$16 sps:$4 sm:$0xff]  }
  0x47   :  { %1337 = vmatpush2.bf16.msra.mxu0 %v2504_v34  ;;  %v2554_v17 = vld [vmem:[#allocation5 + $0x604] ss:$16 sps:$4 sm:$0xff]   ;;  %v2552_v23 = vld [vmem:[#allocation5 + $0x600] ss:$16 sps:$4 sm:$0xff]   ;;  %v2567_v34 = vld [vmem:[#allocation5 + $0xcc] ss:$16 sps:$4 sm:$0xff]  }
  0x48   :  { %1378 = vmatpush2.bf16.msra.mxu1 %v2505_v35  ;;  %1338 = vmatprep.subr.bf16.mxu0 %v2506_v39  ;;  %v2557_v24 = vld [vmem:[#allocation5 + $0x4c4] ss:$16 sps:$4 sm:$0xff]   ;;  %v2555_v28 = vld [vmem:[#allocation5 + $0x4c0] ss:$16 sps:$4 sm:$0xff]  }
  0x49   :  { %1379 = vmatprep.subr.bf16.mxu1 %v2508_v40  ;;  %v2563_v30 = vld [vmem:[#allocation5 + $0x4a4] ss:$16 sps:$4 sm:$0xff]   ;;  %v2561_v33 = vld [vmem:[#allocation5 + $0x4a0] ss:$16 sps:$4 sm:$0xff]   ;;  %v2571_v40 = vld [vmem:[#allocation5 + $0xa8] ss:$16 sps:$4 sm:$0xff]  }
  0x4a   :  { %v2570_v35 = vld [vmem:[#allocation5 + $0x484] ss:$16 sps:$4 sm:$0xff]   ;;  %v2568_v37 = vld [vmem:[#allocation5 + $0x480] ss:$16 sps:$4 sm:$0xff]  }
  0x4b   :  { %1339 = vmatpush2.bf16.msra.mxu0 %v2510_v41  ;;  %v2576_v39 = vld [vmem:[#allocation5 + $0x464] ss:$16 sps:$4 sm:$0xff]   ;;  %v2574_v41 = vld [vmem:[#allocation5 + $0x460] ss:$16 sps:$4 sm:$0xff]  }
  0x4c   :  { %1380 = vmatpush2.bf16.msra.mxu1 %v2511_v44  ;;  %1340 = vmatprep.subr.bf16.mxu0 %v2512_v45  ;;  %v2582_v44 = vld [vmem:[#allocation5 + $0x444] ss:$16 sps:$4 sm:$0xff]   ;;  %v2577_v45 = vld [vmem:[#allocation5 + $0x88] ss:$16 sps:$4 sm:$0xff]   ;;  %v2592_v54 = vld [vmem:[#allocation5 + $0x400] ss:$16 sps:$4 sm:$0xff]  }
  0x4d   :  { %1381 = vmatprep.subr.bf16.mxu1 %v2514_v46  ;;  %v2580_v46 = vld [vmem:[#allocation5 + $0x440] ss:$16 sps:$4 sm:$0xff]   ;;  %v2594_v52 = vld [vmem:[#allocation5 + $0x404] ss:$16 sps:$4 sm:$0xff]  }
  0x4e   :  { %v2606_v60 = vld [vmem:[#allocation5 + $0x5c4] ss:$16 sps:$4 sm:$0xff]   ;;  %v2640_v27 = vld [vmem:[#allocation5 + $0x500] ss:$16 sps:$4 sm:$0xff]  }
  0x4f   :  { %1341 = vmatpush2.bf16.msra.mxu0 %v2516_v47  ;;  %v2585_v47 = vld [vmem:[#allocation5 + $0x6c] ss:$16 sps:$4 sm:$0xff]   ;;  %v2636_v18 = vld [vmem:[#allocation5 + $0x524] ss:$16 sps:$4 sm:$0xff]  }
  0x50   :  { %1382 = vmatpush2.bf16.msra.mxu1 %v2517_v48  ;;  %1342 = vmatprep.subr.bf16.mxu0 %v2518_v50  ;;  %v2588_v48 = vld [vmem:[#allocation5 + $0x424] ss:$16 sps:$4 sm:$0xff]   ;;  %v2586_v50 = vld [vmem:[#allocation5 + $0x420] ss:$16 sps:$4 sm:$0xff]  }
  0x51   :  { %1383 = vmatprep.subr.bf16.mxu1 %v2520_v51  ;;  %v2591_v51 = vld [vmem:[#allocation5 + $0x4c] ss:$16 sps:$4 sm:$0xff]  }
  0x53   :  { %1343 = vmatpush2.bf16.msra.mxu0 %v2522_v53  ;;  %v2589_v53 = vld [vmem:[#allocation5 + $0x48] ss:$16 sps:$4 sm:$0xff]  }
  0x54   :  { %1384 = vmatpush2.bf16.msra.mxu1 %v2523_v56  ;;  %1344 = vmatprep.subr.bf16.mxu0 %v2524_v57  ;;  %v2600_v56 = vld [vmem:[#allocation5 + $0x5e4] ss:$16 sps:$4 sm:$0xff]   ;;  %v2595_v57 = vld [vmem:[#allocation5 + $0x28] ss:$16 sps:$4 sm:$0xff]  }
  0x55   :  { %1385 = vmatprep.subr.bf16.mxu1 %v2526_v58  ;;  %v2598_v58 = vld [vmem:[#allocation5 + $0x5e0] ss:$16 sps:$4 sm:$0xff]  }
  0x57   :  { %1345 = vmatpush2.bf16.msra.mxu0 %v2528_v61  ;;  %v2601_v61 = vld [vmem:[#allocation5 + $0x8] ss:$16 sps:$4 sm:$0xff]  }
  0x58   :  { %1386 = vmatpush2.bf16.msra.mxu1 %v2529_v0  ;;  %1346 = vmatprep.subr.bf16.mxu0 %v2530_v1  ;;  %v2612_v0 = vld [vmem:[#allocation5 + $0x5a4] ss:$16 sps:$4 sm:$0xff]   ;;  %v2607_v1 = vld [vmem:[#allocation5 + $0x1e8] ss:$16 sps:$4 sm:$0xff]  }
  0x59   :  { %1387 = vmatprep.subr.bf16.mxu1 %v2532_v2  ;;  %v2610_v2 = vld [vmem:[#allocation5 + $0x5a0] ss:$16 sps:$4 sm:$0xff]  }
  0x5b   :  { %1347 = vmatpush2.bf16.msra.mxu0 %v2534_v4  ;;  %v2615_v4 = vld [vmem:[#allocation5 + $0x1cc] ss:$16 sps:$4 sm:$0xff]  }
  0x5c   :  { %1388 = vmatpush2.bf16.msra.mxu1 %v2535_v5  ;;  %1348 = vmatprep.subr.bf16.mxu0 %v2536_v6  ;;  %v2618_v5 = vld [vmem:[#allocation5 + $0x584] ss:$16 sps:$4 sm:$0xff]   ;;  %v2613_v6 = vld [vmem:[#allocation5 + $0x1c8] ss:$16 sps:$4 sm:$0xff]  }
  0x5d   :  { %1389 = vmatprep.subr.bf16.mxu1 %v2538_v7  ;;  %v2616_v7 = vld [vmem:[#allocation5 + $0x580] ss:$16 sps:$4 sm:$0xff]  }
  0x5f   :  { %1349 = vmatpush2.bf16.msra.mxu0 %v2540_v8  ;;  %v2621_v8 = vld [vmem:[#allocation5 + $0x1ac] ss:$16 sps:$4 sm:$0xff]  }
  0x60   :  { %1390 = vmatpush2.bf16.msra.mxu1 %v2541_v9  ;;  %1350 = vmatprep.subr.bf16.mxu0 %v2542_v10  ;;  %v2624_v9 = vld [vmem:[#allocation5 + $0x564] ss:$16 sps:$4 sm:$0xff]   ;;  %v2619_v10 = vld [vmem:[#allocation5 + $0x1a8] ss:$16 sps:$4 sm:$0xff]  }
  0x61   :  { %1391 = vmatprep.subr.bf16.mxu1 %v2544_v11  ;;  %v2622_v11 = vld [vmem:[#allocation5 + $0x560] ss:$16 sps:$4 sm:$0xff]  }
  0x63   :  { %1351 = vmatpush2.bf16.msra.mxu0 %v2546_v14  ;;  %v2630_v14 = vld [vmem:[#allocation5 + $0x544] ss:$16 sps:$4 sm:$0xff]  }
  0x64   :  { %1392 = vmatpush2.bf16.msra.mxu1 %v2547_v15  ;;  %1402 = vmatprep.subr.bf16.mxu0 %v2551_v16  ;;  %v2625_v15 = vld [vmem:[#allocation5 + $0x188] ss:$16 sps:$4 sm:$0xff]   ;;  %v2628_v16 = vld [vmem:[#allocation5 + $0x540] ss:$16 sps:$4 sm:$0xff]  }
  0x65   :  { %1457 = vmatprep.subr.bf16.mxu1 %v2554_v17  ;;  %v2633_v17 = vld [vmem:[#allocation5 + $0x16c] ss:$16 sps:$4 sm:$0xff]  }
  0x66   :  { %1353 = vmatmul.mubr.bf16.vlgmr.msra.gmra.mxu0 %v2988_v19 }
  0x67   :  { %1394 = vmatmul.mubr.bf16.vlgmr.msra.gmra.mxu1 %v2990_v20  ;;  %1403 = vmatpush1.bf16.msra.mxu0 %v2549_v22  ;;  %v2634_v22 = vld [vmem:[#allocation5 + $0x520] ss:$16 sps:$4 sm:$0xff]  }
  0x68   :  { %1458 = vmatpush1.bf16.msra.mxu1 %v2552_v23  ;;  %1404 = vmatprep.subr.bf16.mxu0 %v2557_v24  ;;  %v2639_v23 = vld [vmem:[#allocation5 + $0x14c] ss:$16 sps:$4 sm:$0xff]   ;;  %v2642_v24 = vld [vmem:[#allocation5 + $0x504] ss:$16 sps:$4 sm:$0xff]  }
  0x69   :  { %1475 = vmatprep.mubr.bf16.mxu1 %v2920_v29  ;;  %1484 = vmatprep.subr.bf16.mxu1 %v2560_v25  ;;  %v2637_v25 = vld [vmem:[#allocation5 + $0x148] ss:$16 sps:$4 sm:$0xff]  }
  0x6a   :  { %1434 = vmatprep.mubr.bf16.mxu0 %v2992_v26 }
  0x6b   :  { %1405 = vmatpush1.bf16.msra.mxu0 %v2555_v28  ;;  %v2645_v28 = vld [vmem:[#allocation5 + $0x12c] ss:$16 sps:$4 sm:$0xff]  }
  0x6c   :  { %1406 = vmatprep.subr.bf16.mxu0 %v2563_v30  ;;  %v2648_v30 = vld [vmem:[#allocation5 + $0x2ec] ss:$16 sps:$4 sm:$0xff]  }
  0x6f   :  { %2376 = vmatmul.mubr.msk.bf16.vlgmr.msra.gmra.mxu1 %vm1316_vm0, %v2999_v31  ;;  %1407 = vmatpush1.bf16.msra.mxu0 %v2561_v33  ;;  %v2643_v33 = vld [vmem:[#allocation5 + $0x128] ss:$16 sps:$4 sm:$0xff]  }
  0x70   :  { %1485 = vmatpush1.bf16.msra.mxu1 %v2558_v32  ;;  %1408 = vmatprep.subr.bf16.mxu0 %v2570_v35  ;;  %v3006_v32 = vpack.c.bf16 %v2984_v13, %v2984_v13  ;;  %v2651_v35 = vld [vmem:[#allocation5 + $0x10c] ss:$16 sps:$4 sm:$0xff]   ;;  %v2655_v13 = vld [vmem:[#allocation5 + $0x4e8] ss:$16 sps:$4 sm:$0xff]  }
  0x71   :  { %1486 = vmatprep.subr.bf16.mxu1 %v2567_v34  ;;  %1516 = vmatprep.mubr.bf16.mxu1 %v2977_v62  ;;  %v2604_v62 = vld [vmem:[#allocation5 + $0x5c0] ss:$16 sps:$4 sm:$0xff]   ;;  %v2646_v34 = vld [vmem:[#allocation5 + $0x2e8] ss:$16 sps:$4 sm:$0xff]  }
  0x73   :  { %1409 = vmatpush1.bf16.msra.mxu0 %v2568_v37  ;;  %v2649_v37 = vld [vmem:[#allocation5 + $0x108] ss:$16 sps:$4 sm:$0xff]  }
  0x74   :  { %1487 = vmatpush1.bf16.msra.mxu1 %v2565_v36  ;;  %1410 = vmatprep.subr.bf16.mxu0 %v2576_v39  ;;  %v2654_v36 = vld [vmem:[#allocation5 + $0x2cc] ss:$16 sps:$4 sm:$0xff]  }
  0x75   :  { %1488 = vmatprep.subr.bf16.mxu1 %v2573_v38  ;;  %v2652_v38 = vld [vmem:[#allocation5 + $0x2c8] ss:$16 sps:$4 sm:$0xff]   ;;  %v2657_v39 = vld [vmem:[#allocation5 + $0x4ec] ss:$16 sps:$4 sm:$0xff]  }
  0x77   :  { %1411 = vmatpush1.bf16.msra.mxu0 %v2574_v41  ;;  %v2658_v41 = vld [vmem:[#allocation5 + $0x2a8] ss:$16 sps:$4 sm:$0xff]  }
  0x78   :  { %1489 = vmatpush1.bf16.msra.mxu1 %v2571_v40  ;;  %1412 = vmatprep.subr.bf16.mxu0 %v2582_v44  ;;  %v2660_v40 = vld [vmem:[#allocation5 + $0x2ac] ss:$16 sps:$4 sm:$0xff]  }
  0x79   :  { %1490 = vmatprep.subr.bf16.mxu1 %v2579_v42  ;;  %v2663_v42 = vld [vmem:[#allocation5 + $0x4cc] ss:$16 sps:$4 sm:$0xff]  }
  0x7a   :  { %v2666_v44 = vld [vmem:[#allocation5 + $0x28c] ss:$16 sps:$4 sm:$0xff]  }
  0x7b   :  { %1413 = vmatpush1.bf16.msra.mxu0 %v2580_v46  ;;  %v2664_v46 = vld [vmem:[#allocation5 + $0x288] ss:$16 sps:$4 sm:$0xff]  }
  0x7c   :  { %1491 = vmatpush1.bf16.msra.mxu1 %v2577_v45  ;;  %1414 = vmatprep.subr.bf16.mxu0 %v2588_v48  ;;  %v2661_v45 = vld [vmem:[#allocation5 + $0x4c8] ss:$16 sps:$4 sm:$0xff]   ;;  %v2672_v48 = vld [vmem:[#allocation5 + $0x26c] ss:$16 sps:$4 sm:$0xff]  }
  0x7d   :  { %1492 = vmatprep.subr.bf16.mxu1 %v2585_v47  ;;  %v2669_v47 = vld [vmem:[#allocation5 + $0x4ac] ss:$16 sps:$4 sm:$0xff]  }
  0x7f   :  { %1415 = vmatpush1.bf16.msra.mxu0 %v2586_v50  ;;  %v2675_v50 = vld [vmem:[#allocation5 + $0x48c] ss:$16 sps:$4 sm:$0xff]  }
  0x80   :  { %1493 = vmatpush1.bf16.msra.mxu1 %v2583_v49  ;;  %1416 = vmatprep.subr.bf16.mxu0 %v2594_v52  ;;  %v2667_v49 = vld [vmem:[#allocation5 + $0x4a8] ss:$16 sps:$4 sm:$0xff]  }
  0x81   :  { %1494 = vmatprep.subr.bf16.mxu1 %v2591_v51  ;;  %v2678_v51 = vld [vmem:[#allocation5 + $0x24c] ss:$16 sps:$4 sm:$0xff]   ;;  %v2673_v52 = vld [vmem:[#allocation5 + $0x488] ss:$16 sps:$4 sm:$0xff]  }
  0x83   :  { %1417 = vmatpush1.bf16.msra.mxu0 %v2592_v54  ;;  %v2684_v54 = vld [vmem:[#allocation5 + $0x22c] ss:$16 sps:$4 sm:$0xff]  }
  0x84   :  { %1495 = vmatpush1.bf16.msra.mxu1 %v2589_v53  ;;  %1418 = vmatprep.subr.bf16.mxu0 %v2600_v56  ;;  %v2681_v53 = vld [vmem:[#allocation5 + $0x46c] ss:$16 sps:$4 sm:$0xff]   ;;  %v2682_v56 = vld [vmem:[#allocation5 + $0x228] ss:$16 sps:$4 sm:$0xff]  }
  0x85   :  { %1496 = vmatprep.subr.bf16.mxu1 %v2597_v55  ;;  %v2679_v55 = vld [vmem:[#allocation5 + $0x468] ss:$16 sps:$4 sm:$0xff]  }
  0x87   :  { %1419 = vmatpush2.bf16.msra.mxu0 %v2598_v58  ;;  %v2685_v58 = vld [vmem:[#allocation5 + $0x448] ss:$16 sps:$4 sm:$0xff]  }
  0x88   :  { %1497 = vmatpush1.bf16.msra.mxu1 %v2595_v57  ;;  %1420 = vmatprep.subr.bf16.mxu0 %v2606_v60  ;;  %v2690_v57 = vld [vmem:[#allocation5 + $0x20c] ss:$16 sps:$4 sm:$0xff]  }
  0x89   :  { %1498 = vmatprep.subr.bf16.mxu1 %v2603_v59  ;;  %v2688_v59 = vld [vmem:[#allocation5 + $0x208] ss:$16 sps:$4 sm:$0xff]   ;;  %v2693_v60 = vld [vmem:[#allocation5 + $0x42c] ss:$16 sps:$4 sm:$0xff]  }
  0x8b   :  { %1421 = vmatpush2.bf16.msra.mxu0 %v2604_v62  ;;  %v2691_v62 = vld [vmem:[#allocation5 + $0x428] ss:$16 sps:$4 sm:$0xff]  }
  0x8c   :  { %1499 = vmatpush1.bf16.msra.mxu1 %v2601_v61  ;;  %1422 = vmatprep.subr.bf16.mxu0 %v2612_v0  ;;  %v2696_v61 = vld [vmem:[#allocation5 + $0x3ec] ss:$16 sps:$4 sm:$0xff]  }
  0x8d   :  { %1500 = vmatprep.subr.bf16.mxu1 %v2609_v63  ;;  %v2694_v63 = vld [vmem:[#allocation5 + $0x3e8] ss:$16 sps:$4 sm:$0xff]   ;;  %v2699_v0 = vld [vmem:[#allocation5 + $0x40c] ss:$16 sps:$4 sm:$0xff]  }
  0x8f   :  { %1423 = vmatpush2.bf16.msra.mxu0 %v2610_v2  ;;  %v2697_v2 = vld [vmem:[#allocation5 + $0x408] ss:$16 sps:$4 sm:$0xff]  }
  0x90   :  { %1501 = vmatpush2.bf16.msra.mxu1 %v2607_v1  ;;  %1424 = vmatprep.subr.bf16.mxu0 %v2618_v5  ;;  %v2702_v1 = vld [vmem:[#allocation5 + $0x3cc] ss:$16 sps:$4 sm:$0xff]  }
  0x91   :  { %1502 = vmatprep.subr.bf16.mxu1 %v2615_v4  ;;  %v2700_v4 = vld [vmem:[#allocation5 + $0x3c8] ss:$16 sps:$4 sm:$0xff]   ;;  %v2705_v5 = vld [vmem:[#allocation5 + $0x5ec] ss:$16 sps:$4 sm:$0xff]  }
  0x93   :  { %1425 = vmatpush2.bf16.msra.mxu0 %v2616_v7  ;;  %v2703_v7 = vld [vmem:[#allocation5 + $0x5e8] ss:$16 sps:$4 sm:$0xff]  }
  0x94   :  { %1503 = vmatpush2.bf16.msra.mxu1 %v2613_v6  ;;  %1426 = vmatprep.subr.bf16.mxu0 %v2624_v9  ;;  %v2708_v6 = vld [vmem:[#allocation5 + $0x3ac] ss:$16 sps:$4 sm:$0xff]  }
  0x95   :  { %1504 = vmatprep.subr.bf16.mxu1 %v2621_v8  ;;  %v2706_v8 = vld [vmem:[#allocation5 + $0x3a8] ss:$16 sps:$4 sm:$0xff]   ;;  %v2711_v9 = vld [vmem:[#allocation5 + $0x5cc] ss:$16 sps:$4 sm:$0xff]  }
  0x97   :  { %1427 = vmatpush2.bf16.msra.mxu0 %v2622_v11  ;;  %v2709_v11 = vld [vmem:[#allocation5 + $0x5c8] ss:$16 sps:$4 sm:$0xff]  }
  0x98   :  { %1505 = vmatpush2.bf16.msra.mxu1 %v2619_v10  ;;  %1428 = vmatprep.subr.bf16.mxu0 %v2630_v14  ;;  %v2714_v10 = vld [vmem:[#allocation5 + $0x38c] ss:$16 sps:$4 sm:$0xff]  }
  0x99   :  { %1506 = vmatprep.subr.bf16.mxu1 %v2627_v12  ;;  %v2712_v12 = vld [vmem:[#allocation5 + $0x388] ss:$16 sps:$4 sm:$0xff]   ;;  %v2717_v14 = vld [vmem:[#allocation5 + $0x5ac] ss:$16 sps:$4 sm:$0xff]  }
  0x9b   :  { %1429 = vmatpush2.bf16.msra.mxu0 %v2628_v16  ;;  %v2715_v16 = vld [vmem:[#allocation5 + $0x5a8] ss:$16 sps:$4 sm:$0xff]  }
  0x9c   :  { %1507 = vmatpush2.bf16.msra.mxu1 %v2625_v15  ;;  %1430 = vmatprep.subr.bf16.mxu0 %v2636_v18  ;;  %v2720_v15 = vld [vmem:[#allocation5 + $0x36c] ss:$16 sps:$4 sm:$0xff]  }
  0x9d   :  { %1508 = vmatprep.subr.bf16.mxu1 %v2633_v17  ;;  %v2718_v17 = vld [vmem:[#allocation5 + $0x368] ss:$16 sps:$4 sm:$0xff]   ;;  %v2723_v18 = vld [vmem:[#allocation5 + $0x58c] ss:$16 sps:$4 sm:$0xff]  }
  0x9f   :  { %1431 = vmatpush2.bf16.msra.mxu0 %v2634_v22  ;;  %v2721_v22 = vld [vmem:[#allocation5 + $0x588] ss:$16 sps:$4 sm:$0xff]  }
  0xa0   :  { %1509 = vmatpush2.bf16.msra.mxu1 %v2631_v21  ;;  %1432 = vmatprep.subr.bf16.mxu0 %v2642_v24  ;;  %v2726_v21 = vld [vmem:[#allocation5 + $0x34c] ss:$16 sps:$4 sm:$0xff]  }
  0xa1   :  { %1510 = vmatprep.subr.bf16.mxu1 %v2639_v23  ;;  %v2724_v23 = vld [vmem:[#allocation5 + $0x348] ss:$16 sps:$4 sm:$0xff]   ;;  %v2729_v24 = vld [vmem:[#allocation5 + $0x56c] ss:$16 sps:$4 sm:$0xff]  }
  0xa3   :  { %1433 = vmatpush2.bf16.msra.mxu0 %v2640_v27  ;;  %v2727_v27 = vld [vmem:[#allocation5 + $0x568] ss:$16 sps:$4 sm:$0xff]  }
  0xa4   :  { %1511 = vmatpush2.bf16.msra.mxu1 %v2637_v25  ;;  %1525 = vmatprep.subr.bf16.mxu0 %v2648_v30  ;;  %v2732_v25 = vld [vmem:[#allocation5 + $0x32c] ss:$16 sps:$4 sm:$0xff]  }
  0xa5   :  { %1512 = vmatprep.subr.bf16.mxu1 %v2645_v28  ;;  %v2730_v28 = vld [vmem:[#allocation5 + $0x328] ss:$16 sps:$4 sm:$0xff]   ;;  %v2735_v30 = vld [vmem:[#allocation5 + $0x54c] ss:$16 sps:$4 sm:$0xff]  }
  0xa6   :  { %1435 = vmatmul.mubr.bf16.vlgmr.msra.gmra.mxu0 %v3006_v32 }
  0xa7   :  { %1526 = vmatpush1.bf16.msra.mxu0 %v2646_v34  ;;  %1557 = vmatprep.mubr.bf16.mxu0 %v2979_v3  ;;  %v2670_v3 = vld [vmem:[#allocation5 + $0x268] ss:$16 sps:$4 sm:$0xff]  }
  0xa8   :  { %1513 = vmatpush2.bf16.msra.mxu1 %v2643_v33  ;;  %1527 = vmatprep.subr.bf16.mxu0 %v2654_v36  ;;  %v2738_v33 = vld [vmem:[#allocation5 + $0x30c] ss:$16 sps:$4 sm:$0xff]   ;;  %v2733_v34 = vld [vmem:[#allocation5 + $0x548] ss:$16 sps:$4 sm:$0xff]  }
  0xa9   :  { %1514 = vmatprep.subr.bf16.mxu1 %v2651_v35  ;;  %v2736_v35 = vld [vmem:[#allocation5 + $0x308] ss:$16 sps:$4 sm:$0xff]   ;;  %v2741_v36 = vld [vmem:[#allocation5 + $0x52c] ss:$16 sps:$4 sm:$0xff]  }
  0xab   :  { %1528 = vmatpush1.bf16.msra.mxu0 %v2652_v38  ;;  %v2739_v38 = vld [vmem:[#allocation5 + $0x528] ss:$16 sps:$4 sm:$0xff]  }
  0xac   :  { %1515 = vmatpush2.bf16.msra.mxu1 %v2649_v37  ;;  %1529 = vmatprep.subr.bf16.mxu0 %v2660_v40  ;;  %v2744_v37 = vld [vmem:[#allocation5 + $0x60c] ss:$16 sps:$4 sm:$0xff]  }
  0xad   :  { %1566 = vmatprep.subr.bf16.mxu1 %v2657_v39  ;;  %v2742_v39 = vld [vmem:[#allocation5 + $0x608] ss:$16 sps:$4 sm:$0xff]   ;;  %v2747_v40 = vld [vmem:[#allocation5 + $0x50c] ss:$16 sps:$4 sm:$0xff]  }
  0xaf   :  { %1517 = vmatmul.mubr.bf16.vlgmr.msra.gmra.mxu1 %v2988_v19  ;;  %1530 = vmatpush1.bf16.msra.mxu0 %v2658_v41  ;;  %v2676_v19 = vld [vmem:[#allocation5 + $0x248] ss:$16 sps:$4 sm:$0xff]  }
  0xb0   :  { %1567 = vmatpush1.bf16.msra.mxu1 %v2655_v13  ;;  %1531 = vmatprep.subr.bf16.mxu0 %v2666_v44  ;;  %v2750_v13 = vld [vmem:[#allocation7 + $0x74] ss:$8 sps:$4 sm:$0xff]   ;;  %v2745_v41 = vld [vmem:[#allocation5 + $0x508] ss:$16 sps:$4 sm:$0xff]   ;;  %v2753_v44 = vld [vmem:[#allocation7 + $0x64] ss:$8 sps:$4 sm:$0xff]  }
  0xb1   :  { %1568 = vmatprep.subr.bf16.mxu1 %v2663_v42  ;;  %1598 = vmatprep.mubr.bf16.mxu1 %v2992_v26  ;;  %v2687_v26 = vld [vmem:[#allocation5 + $0x44c] ss:$16 sps:$4 sm:$0xff]   ;;  %v2748_v42 = vld [vmem:[#allocation7 + $0x70] ss:$8 sps:$4 sm:$0xff]  }
  0xb3   :  { %1532 = vmatpush1.bf16.msra.mxu0 %v2664_v46  ;;  %v2756_v46 = vld [vmem:[#allocation7 + $0x54] ss:$8 sps:$4 sm:$0xff]  }
  0xb4   :  { %1569 = vmatpush1.bf16.msra.mxu1 %v2661_v45  ;;  %1533 = vmatprep.subr.bf16.mxu0 %v2672_v48  ;;  %v2751_v45 = vld [vmem:[#allocation7 + $0x60] ss:$8 sps:$4 sm:$0xff]   ;;  %v2796_v48 = vld [vmem:[#allocation7 + $0x170] ss:$8 sps:$4 sm:$0xff]  }
  0xb5   :  { %1570 = vmatprep.subr.bf16.mxu1 %v2669_v47  ;;  %v2759_v47 = vld [vmem:[#allocation7 + $0x44] ss:$8 sps:$4 sm:$0xff]  }
  0xb7   :  { %1534 = vmatpush1.bf16.msra.mxu0 %v2670_v3  ;;  %v2757_v3 = vld [vmem:[#allocation7 + $0x40] ss:$8 sps:$4 sm:$0xff]  }
  0xb8   :  { %1571 = vmatpush1.bf16.msra.mxu1 %v2667_v49  ;;  %1535 = vmatprep.subr.bf16.mxu0 %v2678_v51  ;;  %v2798_v49 = vld [vmem:[#allocation7 + $0x174] ss:$8 sps:$4 sm:$0xff]   ;;  %v2760_v51 = vld [vmem:[#allocation7 + $0x30] ss:$8 sps:$4 sm:$0xff]  }
  0xb9   :  { %1572 = vmatprep.subr.bf16.mxu1 %v2675_v50  ;;  %v2799_v50 = vld [vmem:[#allocation7 + $0x160] ss:$8 sps:$4 sm:$0xff]  }
  0xbb   :  { %1536 = vmatpush1.bf16.msra.mxu0 %v2676_v19  ;;  %v2765_v19 = vld [vmem:[#allocation7 + $0x24] ss:$8 sps:$4 sm:$0xff]  }
  0xbc   :  { %1573 = vmatpush1.bf16.msra.mxu1 %v2673_v52  ;;  %1537 = vmatprep.subr.bf16.mxu0 %v2684_v54  ;;  %v2802_v52 = vld [vmem:[#allocation7 + $0x150] ss:$8 sps:$4 sm:$0xff]   ;;  %v2763_v54 = vld [vmem:[#allocation7 + $0x20] ss:$8 sps:$4 sm:$0xff]  }
  0xbd   :  { %1574 = vmatprep.subr.bf16.mxu1 %v2681_v53  ;;  %v2807_v53 = vld [vmem:[#allocation7 + $0x144] ss:$8 sps:$4 sm:$0xff]  }
  0xbf   :  { %1538 = vmatpush1.bf16.msra.mxu0 %v2682_v56  ;;  %v2768_v56 = vld [vmem:[#allocation7 + $0x14] ss:$8 sps:$4 sm:$0xff]  }
  0xc0   :  { %1575 = vmatpush1.bf16.msra.mxu1 %v2679_v55  ;;  %1539 = vmatprep.subr.bf16.mxu0 %v2690_v57  ;;  %v2805_v55 = vld [vmem:[#allocation7 + $0x140] ss:$8 sps:$4 sm:$0xff]   ;;  %v2766_v57 = vld [vmem:[#allocation7 + $0x10] ss:$8 sps:$4 sm:$0xff]  }
  0xc1   :  { %1576 = vmatprep.subr.bf16.mxu1 %v2687_v26  ;;  %v2810_v26 = vld [vmem:[#allocation7 + $0x134] ss:$8 sps:$4 sm:$0xff]  }
  0xc3   :  { %1540 = vmatpush1.bf16.msra.mxu0 %v2688_v59  ;;  %v2771_v59 = vld [vmem:[#allocation7 + $0x4] ss:$8 sps:$4 sm:$0xff]  }
  0xc4   :  { %1577 = vmatpush1.bf16.msra.mxu1 %v2685_v58  ;;  %1541 = vmatprep.subr.bf16.mxu0 %v2696_v61  ;;  %v2808_v58 = vld [vmem:[#allocation7 + $0x130] ss:$8 sps:$4 sm:$0xff]   ;;  %v2769_v61 = vld [vmem:[#allocation7] ss:$8 sps:$4 sm:$0xff]  }
  0xc5   :  { %1578 = vmatprep.subr.bf16.mxu1 %v2693_v60  ;;  %v2813_v60 = vld [vmem:[#allocation7 + $0x124] ss:$8 sps:$4 sm:$0xff]  }
  0xc7   :  { %1542 = vmatpush2.bf16.msra.mxu0 %v2694_v63  ;;  %v2774_v63 = vld [vmem:[#allocation7 + $0xf4] ss:$8 sps:$4 sm:$0xff]  }
  0xc8   :  { %1579 = vmatpush1.bf16.msra.mxu1 %v2691_v62  ;;  %1543 = vmatprep.subr.bf16.mxu0 %v2702_v1  ;;  %v2811_v62 = vld [vmem:[#allocation7 + $0x120] ss:$8 sps:$4 sm:$0xff]   ;;  %v2772_v1 = vld [vmem:[#allocation7 + $0xf0] ss:$8 sps:$4 sm:$0xff]  }
  0xc9   :  { %1580 = vmatprep.subr.bf16.mxu1 %v2699_v0  ;;  %v2816_v0 = vld [vmem:[#allocation7 + $0x114] ss:$8 sps:$4 sm:$0xff]  }
  0xcb   :  { %1544 = vmatpush2.bf16.msra.mxu0 %v2700_v4  ;;  %v2777_v4 = vld [vmem:[#allocation7 + $0xe4] ss:$8 sps:$4 sm:$0xff]  }
  0xcc   :  { %1581 = vmatpush1.bf16.msra.mxu1 %v2697_v2  ;;  %1545 = vmatprep.subr.bf16.mxu0 %v2708_v6  ;;  %v2814_v2 = vld [vmem:[#allocation7 + $0x110] ss:$8 sps:$4 sm:$0xff]   ;;  %v2775_v6 = vld [vmem:[#allocation7 + $0xe0] ss:$8 sps:$4 sm:$0xff]  }
  0xcd   :  { %1582 = vmatprep.subr.bf16.mxu1 %v2705_v5  ;;  %v2819_v5 = vld [vmem:[#allocation7 + $0x104] ss:$8 sps:$4 sm:$0xff]  }
  0xcf   :  { %1546 = vmatpush2.bf16.msra.mxu0 %v2706_v8  ;;  %v2780_v8 = vld [vmem:[#allocation7 + $0xd4] ss:$8 sps:$4 sm:$0xff]  }
  0xd0   :  { %1583 = vmatpush2.bf16.msra.mxu1 %v2703_v7  ;;  %1547 = vmatprep.subr.bf16.mxu0 %v2714_v10  ;;  %v2817_v7 = vld [vmem:[#allocation7 + $0x100] ss:$8 sps:$4 sm:$0xff]   ;;  %v2778_v10 = vld [vmem:[#allocation7 + $0xd0] ss:$8 sps:$4 sm:$0xff]  }
  0xd1   :  { %1584 = vmatprep.subr.bf16.mxu1 %v2711_v9  ;;  %v2822_v9 = vld [vmem:[#allocation7 + $0x1f4] ss:$8 sps:$4 sm:$0xff]  }
  0xd3   :  { %1548 = vmatpush2.bf16.msra.mxu0 %v2712_v12  ;;  %v2783_v12 = vld [vmem:[#allocation7 + $0xc4] ss:$8 sps:$4 sm:$0xff]  }
  0xd4   :  { %1585 = vmatpush2.bf16.msra.mxu1 %v2709_v11  ;;  %1549 = vmatprep.subr.bf16.mxu0 %v2720_v15  ;;  %v2820_v11 = vld [vmem:[#allocation7 + $0x1f0] ss:$8 sps:$4 sm:$0xff]   ;;  %v2781_v15 = vld [vmem:[#allocation7 + $0xc0] ss:$8 sps:$4 sm:$0xff]  }
  0xd5   :  { %1586 = vmatprep.subr.bf16.mxu1 %v2717_v14  ;;  %v2825_v14 = vld [vmem:[#allocation7 + $0x1e4] ss:$8 sps:$4 sm:$0xff]  }
  0xd7   :  { %1550 = vmatpush2.bf16.msra.mxu0 %v2718_v17  ;;  %v2786_v17 = vld [vmem:[#allocation7 + $0xb4] ss:$8 sps:$4 sm:$0xff]  }
  0xd8   :  { %1587 = vmatpush2.bf16.msra.mxu1 %v2715_v16  ;;  %1551 = vmatprep.subr.bf16.mxu0 %v2726_v21  ;;  %v2823_v16 = vld [vmem:[#allocation7 + $0x1e0] ss:$8 sps:$4 sm:$0xff]   ;;  %v2784_v21 = vld [vmem:[#allocation7 + $0xb0] ss:$8 sps:$4 sm:$0xff]  }
  0xd9   :  { %1588 = vmatprep.subr.bf16.mxu1 %v2723_v18  ;;  %v2828_v18 = vld [vmem:[#allocation7 + $0x1d4] ss:$8 sps:$4 sm:$0xff]  }
  0xdb   :  { %1552 = vmatpush2.bf16.msra.mxu0 %v2724_v23  ;;  %v2789_v23 = vld [vmem:[#allocation7 + $0xa4] ss:$8 sps:$4 sm:$0xff]  }
  0xdc   :  { %1589 = vmatpush2.bf16.msra.mxu1 %v2721_v22  ;;  %1553 = vmatprep.subr.bf16.mxu0 %v2732_v25  ;;  %v2826_v22 = vld [vmem:[#allocation7 + $0x1d0] ss:$8 sps:$4 sm:$0xff]   ;;  %v2792_v25 = vld [vmem:[#allocation7 + $0x94] ss:$8 sps:$4 sm:$0xff]  }
  0xdd   :  { %1590 = vmatprep.subr.bf16.mxu1 %v2729_v24  ;;  %v2787_v24 = vld [vmem:[#allocation7 + $0xa0] ss:$8 sps:$4 sm:$0xff]  }
  0xdf   :  { %1554 = vmatpush2.bf16.msra.mxu0 %v2730_v28  ;;  %v2795_v28 = vld [vmem:[#allocation7 + $0x84] ss:$8 sps:$4 sm:$0xff]  }
  0xe0   :  { %1591 = vmatpush2.bf16.msra.mxu1 %v2727_v27  ;;  %1555 = vmatprep.subr.bf16.mxu0 %v2738_v33  ;;  %v2790_v27 = vld [vmem:[#allocation7 + $0x90] ss:$8 sps:$4 sm:$0xff]  }
  0xe1   :  { %1592 = vmatprep.subr.bf16.mxu1 %v2735_v30 }
  0xe3   :  { %1556 = vmatpush2.bf16.msra.mxu0 %v2736_v35  ;;  %v2793_v35 = vld [vmem:[#allocation7 + $0x80] ss:$8 sps:$4 sm:$0xff]  }
  0xe4   :  { %1593 = vmatpush2.bf16.msra.mxu1 %v2733_v34  ;;  %1621 = vmatprep.subr.bf16.mxu0 %v2744_v37  ;;  %v2831_v34 = vld [vmem:[#allocation7 + $0x1c4] ss:$8 sps:$4 sm:$0xff]  }
  0xe5   :  { %1594 = vmatprep.subr.bf16.mxu1 %v2741_v36  ;;  %v2829_v36 = vld [vmem:[#allocation7 + $0x1c0] ss:$8 sps:$4 sm:$0xff]  }
  0xe6   :  { %1558 = vmatmul.mubr.bf16.vlgmr.msra.gmra.mxu0 %v2990_v20  ;;  %v2754_v20 = vld [vmem:[#allocation7 + $0x50] ss:$8 sps:$4 sm:$0xff]  }
  0xe7   :  { %1622 = vmatpush1.bf16.msra.mxu0 %v2742_v39  ;;  %1639 = vmatprep.mubr.bf16.mxu0 %v2920_v29  ;;  %v2801_v29 = vld [vmem:[#allocation7 + $0x164] ss:$8 sps:$4 sm:$0xff]  }
  0xe8   :  { %1595 = vmatpush2.bf16.msra.mxu1 %v2739_v38  ;;  %2056 = vmatprep.subr.bf16.mxu0 %v2750_v13  ;;  %v2832_v13 = vld [vmem:[#allocation7 + $0x1b0] ss:$8 sps:$4 sm:$0xff]  }
  0xe9   :  { %1596 = vmatprep.subr.bf16.mxu1 %v2747_v40 }
  0xec   :  { %1597 = vmatpush2.bf16.msra.mxu1 %v2745_v41  ;;  %v2834_v41 = vld [vmem:[#allocation7 + $0x1b4] ss:$8 sps:$4 sm:$0xff]  }
  0xed   :  { %2097 = vmatprep.subr.bf16.mxu1 %v2798_v49  ;;  %v2840_v49 = vld [vmem:[#allocation7 + $0x194] ss:$8 sps:$4 sm:$0xff]  }
  0xee   :  { %2377 = vmatmul.mubr.msk.bf16.vlgmr.msra.gmra.mxu0 %vm1316_vm0, %v2999_v31  ;;  %v2804_v31 = vld [vmem:[#allocation7 + $0x154] ss:$8 sps:$4 sm:$0xff]  }
  0xef   :  { %1599 = vmatmul.mubr.bf16.vlgmr.msra.gmra.mxu1 %v3006_v32  ;;  %2057 = vmatpush1.bf16.msra.mxu0 %v2748_v42  ;;  %v2762_v32 = vld [vmem:[#allocation7 + $0x34] ss:$8 sps:$4 sm:$0xff]  }
  0xf0   :  { %2058 = vmatprep.subr.bf16.mxu0 %v2753_v44  ;;  %2098 = vmatpush1.bf16.msra.mxu1 %v2796_v48 }
  0xf1   :  { %2099 = vmatprep.subr.bf16.mxu1 %v2801_v29  ;;  %v2838_v29 = vld [vmem:[#allocation7 + $0x190] ss:$8 sps:$4 sm:$0xff]  }
  0xf3   :  { %2059 = vmatpush1.bf16.msra.mxu0 %v2751_v45 }
  0xf4   :  { %2060 = vmatprep.subr.bf16.mxu0 %v2756_v46  ;;  %2100 = vmatpush1.bf16.msra.mxu1 %v2799_v50  ;;  %v2837_v46 = vld [vmem:[#allocation7 + $0x1a4] ss:$8 sps:$4 sm:$0xff]  }
  0xf5   :  { %2101 = vmatprep.subr.bf16.mxu1 %v2804_v31  ;;  %v2843_v50 = vld [vmem:[#allocation7 + $0x184] ss:$8 sps:$4 sm:$0xff]   ;;  %v3018_v31 = vsub.s32 0, %v2970_v43 }
  0xf7   :  { %2061 = vmatpush1.bf16.msra.mxu0 %v2754_v20  ;;  %v2835_v20 = vld [vmem:[#allocation7 + $0x1a0] ss:$8 sps:$4 sm:$0xff]  }
  0xf8   :  { %2062 = vmatprep.subr.bf16.mxu0 %v2759_v47  ;;  %2102 = vmatpush1.bf16.msra.mxu1 %v2802_v52  ;;  %v3024_v52 = vsub.s32 1, %v2970_v43 }
  0xf9   :  { %2103 = vmatprep.subr.bf16.mxu1 %v2807_v53 }
  0xfb   :  { %2063 = vmatpush1.bf16.msra.mxu0 %v2757_v3 }
  0xfc   :  { %2064 = vmatprep.subr.bf16.mxu0 %v2762_v32  ;;  %2104 = vmatpush1.bf16.msra.mxu1 %v2805_v55  ;;  %v2841_v32 = vld [vmem:[#allocation7 + $0x180] ss:$8 sps:$4 sm:$0xff]  }
  0xfd   :  { %2105 = vmatprep.subr.bf16.mxu1 %v2810_v26 }
  0xff   :  { %2065 = vmatpush1.bf16.msra.mxu0 %v2760_v51  ;;  %v314_v51 = vld [vmem:[%s3048_s2] sm:$0xf] }
 0x100   :  { %2066 = vmatprep.subr.bf16.mxu0 %v2765_v19  ;;  %2106 = vmatpush1.bf16.msra.mxu1 %v2808_v58  ;;  %v319_v19 = vrot.slane %v314_v51, %v3018_v31  ;;  %v323_v53 = vrot.slane %v314_v51, %v3024_v52 }
 0x101   :  { %2107 = vmatprep.subr.bf16.mxu1 %v2813_v60 }
 0x103   :  { %2067 = vmatpush1.bf16.msra.mxu0 %v2763_v54 }
 0x104   :  { %2068 = vmatprep.subr.bf16.mxu0 %v2768_v56  ;;  %2108 = vmatpush1.bf16.msra.mxu1 %v2811_v62 }
 0x105   :  { %2109 = vmatprep.subr.bf16.mxu1 %v2816_v0 }
 0x107   :  { %2069 = vmatpush1.bf16.msra.mxu0 %v2766_v57 }
 0x108   :  { %2070 = vmatprep.subr.bf16.mxu0 %v2771_v59  ;;  %2110 = vmatpush1.bf16.msra.mxu1 %v2814_v2 }
 0x109   :  { %2111 = vmatprep.subr.bf16.mxu1 %v2819_v5 }
 0x10b   :  { %2071 = vmatpush1.bf16.msra.mxu0 %v2769_v61 }
 0x10c   :  { %2072 = vmatprep.subr.bf16.mxu0 %v2774_v63  ;;  %2112 = vmatpush1.bf16.msra.mxu1 %v2817_v7 }
 0x10d   :  { %2113 = vmatprep.subr.bf16.mxu1 %v2822_v9 }
 0x10f   :  { %2073 = vmatpush2.bf16.msra.mxu0 %v2772_v1 }
 0x110   :  { %2074 = vmatprep.subr.bf16.mxu0 %v2777_v4  ;;  %2114 = vmatpush2.bf16.msra.mxu1 %v2820_v11 }
 0x111   :  { %2115 = vmatprep.subr.bf16.mxu1 %v2825_v14  ;;  %v330_v14 = vsub.s32 3, %v2970_v43 }
 0x113   :  { %2075 = vmatpush2.bf16.msra.mxu0 %v2775_v6 }
 0x114   :  { %2076 = vmatprep.subr.bf16.mxu0 %v2780_v8  ;;  %2116 = vmatpush2.bf16.msra.mxu1 %v2823_v16 }
 0x115   :  { %2117 = vmatprep.subr.bf16.mxu1 %v2828_v18  ;;  %v331_v18 = vrot.slane %v314_v51, %v330_v14 }
 0x117   :  { %2077 = vmatpush2.bf16.msra.mxu0 %v2778_v10 }
 0x118   :  { %2078 = vmatprep.subr.bf16.mxu0 %v2783_v12  ;;  %2118 = vmatpush2.bf16.msra.mxu1 %v2826_v22  ;;  %v326_v12 = vsub.s32 2, %v2970_v43 }
 0x119   :  { %2119 = vmatprep.subr.bf16.mxu1 %v2831_v34 }
 0x11a   :  { %v327_v16 = vrot.slane %v314_v51, %v326_v12 }
 0x11b   :  { %2079 = vmatpush2.bf16.msra.mxu0 %v2781_v15 }
 0x11c   :  { %2080 = vmatprep.subr.bf16.mxu0 %v2786_v17  ;;  %2120 = vmatpush2.bf16.msra.mxu1 %v2829_v36 }
 0x11d   :  { %2121 = vmatprep.subr.bf16.mxu1 %v2834_v41 }
 0x11f   :  { %2081 = vmatpush2.bf16.msra.mxu0 %v2784_v21 }
 0x120   :  { %2082 = vmatprep.subr.bf16.mxu0 %v2789_v23  ;;  %2122 = vmatpush2.bf16.msra.mxu1 %v2832_v13 }
 0x121   :  { %2123 = vmatprep.subr.bf16.mxu1 %v2837_v46 }
 0x123   :  { %2083 = vmatpush2.bf16.msra.mxu0 %v2787_v24 }
 0x124   :  { %2084 = vmatprep.subr.bf16.mxu0 %v2792_v25  ;;  %2124 = vmatpush2.bf16.msra.mxu1 %v2835_v20 }
 0x125   :  { %2125 = vmatprep.subr.bf16.mxu1 %v2840_v49 }
 0x126   :  { %v1354_v30 = vpop.f32.mrf.mxu0 }
 0x127   :  { %v1395_v33 = vpop.f32.mrf.mxu1  ;;  %2085 = vmatpush2.bf16.msra.mxu0 %v2790_v27  ;;  %v1355_v54 = vadd.f32 %v1354_v30, %v319_v19 }
 0x128   :  { %v1356_v37 = vpop.f32.mrf.mxu0  ;;  %2086 = vmatprep.subr.bf16.mxu0 %v2795_v28  ;;  %2126 = vmatpush2.bf16.msra.mxu1 %v2838_v29 }
 0x129   :  { %v1397_v38 = vpop.f32.mrf.mxu1  ;;  %2127 = vmatprep.subr.bf16.mxu1 %v2843_v50  ;;  %v1357_v55 = vadd.f32 %v1356_v37, %v323_v53  ;;  %v1396_v56 = vadd.f32 %v1395_v33, %v1355_v54  ;;  %v2142_v53 = vld [vmem:[%s3051_s5] sm:$0x3] }
 0x12a   :  { %v1358_v39 = vpop.f32.mrf.mxu0 }
 0x12b   :  { %v1399_v40 = vpop.f32.mrf.mxu1  ;;  %2087 = vmatpush2.bf16.msra.mxu0 %v2793_v35  ;;  %v1398_v57 = vadd.f32 %v1397_v38, %v1357_v55 }
 0x12c   :  { %v1359_v42 = vpop.f32.mrf.mxu0  ;;  %2128 = vmatpush2.bf16.msra.mxu1 %v2841_v32 }
 0x12d   :  { %v1400_v44 = vpop.f32.mrf.mxu1 }
 0x12f   :  { %v1477_v45 = vpop.f32.mrf.mxu1 }
 0x131   :  { %v1479_v47 = vpop.f32.mrf.mxu1 }
 0x133   :  { %v1481_v48 = vpop.f32.mrf.mxu1 }
 0x135   :  { %v1482_v3 = vpop.f32.mrf.mxu1 }
 0x136   :  { %v1724_v3 = vld [vmem:[%s3050_s4] sm:$0x3] }
 0x137   :  { %v1729_v50 = vrot.slane %v1724_v3, %v3018_v31  ;;  %v1733_v32 = vrot.slane %v1724_v3, %v3024_v52 }
 0x166   :  { %v1436_v26 = vpop.f32.mrf.mxu0 }
 0x167   :  { %v1437_v58 = vadd.f32 %v1436_v26, %v1396_v56 }
 0x168   :  { %v1438_v59 = vpop.f32.mrf.mxu0 }
 0x169   :  { %v1478_v60 = vadd.f32 %v1477_v45, %v1437_v58  ;;  %v1439_v61 = vadd.f32 %v1438_v59, %v1398_v57  ;;  %v2147_v58 = vrot.slane %v2142_v53, %v3018_v31 }
 0x16a   :  { %v1440_v62 = vpop.f32.mrf.mxu0 }
 0x16b   :  { %v1648_v63 = vmul.f32 0.2, %v1478_v60  ;;  %v1480_v0 = vadd.f32 %v1479_v47, %v1439_v61  ;;  %v2151_v62 = vrot.slane %v2142_v53, %v3024_v52 }
 0x16c   :  { %v1441_v1 = vpop.f32.mrf.mxu0 }
 0x16d   :  { %v1649_v2 = vmul.f32 0.2, %v1480_v0  ;;  %v1652_v4 = vmax.f32 %v1478_v60, %v1648_v63 }
 0x16f   :  { %v1518_v5 = vpop.f32.mrf.mxu1  ;;  %v1653_v6 = vmax.f32 %v1480_v0, %v1649_v2  ;;  %v1656_v9 = vpack.c.bf16 %v1652_v4, %v1652_v4 }
 0x170   :  { %v1519_v22 = vadd.f32 %v1518_v5, %v327_v16 }
 0x171   :  { %v1520_v7 = vpop.f32.mrf.mxu1  ;;  %v1657_v8 = vpack.c.bf16 %v1653_v6, %v1653_v6 }
 0x172   :  { %v1521_v24 = vadd.f32 %v1520_v7, %v331_v18  ;;  %v2163_v7 = vstv %s3052_s6 }
 0x173   :  { %v1522_v10 = vpop.f32.mrf.mxu1  ;;  %2088 = vmatprep.mubr.bf16.mxu0 %v1657_v8 }
 0x174   :  { %2089 = vmatmul.mubr.bf16.vlgmr.msra.gmra.mxu0 %v1656_v9 }
 0x175   :  { %v1523_v11 = vpop.f32.mrf.mxu1 }
 0x1a6   :  { %v1559_v15 = vpop.f32.mrf.mxu0 }
 0x1a7   :  { %v1560_v25 = vadd.f32 %v1559_v15, %v1519_v22 }
 0x1a8   :  { %v1561_v17 = vpop.f32.mrf.mxu0 }
 0x1a9   :  { %v1562_v30 = vadd.f32 %v1561_v17, %v1521_v24 }
 0x1aa   :  { %v1563_v21 = vpop.f32.mrf.mxu0 }
 0x1ac   :  { %v1564_v23 = vpop.f32.mrf.mxu0 }
 0x1ae   :  { %v1641_v28 = vpop.f32.mrf.mxu0 }
 0x1af   :  { %v1600_v27 = vpop.f32.mrf.mxu1 }
 0x1b0   :  { %v1601_v33 = vadd.f32 %v1600_v27, %v1560_v25  ;;  %v1643_v35 = vpop.f32.mrf.mxu0 }
 0x1b1   :  { %v1602_v34 = vpop.f32.mrf.mxu1 }
 0x1b2   :  { %v1642_v36 = vadd.f32 %v1641_v28, %v1601_v33  ;;  %v1603_v37 = vadd.f32 %v1602_v34, %v1562_v30  ;;  %v1645_v39 = vpop.f32.mrf.mxu0 }
 0x1b3   :  { %v1604_v38 = vpop.f32.mrf.mxu1 }
 0x1b4   :  { %v1650_v43 = vmul.f32 0.2, %v1642_v36  ;;  %v1644_v40 = vadd.f32 %v1643_v35, %v1603_v37  ;;  %v1646_v41 = vpop.f32.mrf.mxu0 }
 0x1b5   :  { %v1605_v13 = vpop.f32.mrf.mxu1 }
 0x1b6   :  { %v1651_v42 = vmul.f32 0.2, %v1644_v40  ;;  %v1654_v44 = vmax.f32 %v1642_v36, %v1650_v43 }
 0x1b8   :  { %v1655_v45 = vmax.f32 %v1644_v40, %v1651_v42  ;;  %v1658_v20 = vpack.c.bf16 %v1654_v44, %v1654_v44 }
 0x1ba   :  { %v1659_v46 = vpack.c.bf16 %v1655_v45, %v1655_v45 }
 0x1bc   :  { %2129 = vmatprep.mubr.bf16.mxu1 %v1659_v46 }
 0x1bd   :  { %2130 = vmatmul.mubr.bf16.vlgmr.msra.gmra.mxu1 %v1658_v20 }
 0x234   :  { %v2090_v47 = vpop.f32.mrf.mxu0 }
 0x235   :  { %v2091_v51 = vadd.f32 %v2090_v47, %v1729_v50 }
 0x236   :  { %v2092_v48 = vpop.f32.mrf.mxu0 }
 0x237   :  { %v2093_v54 = vadd.f32 %v2092_v48, %v1733_v32 }
 0x238   :  { %v2094_v49 = vpop.f32.mrf.mxu0 }
 0x23a   :  { %v2095_v29 = vpop.f32.mrf.mxu0 }
 0x27d   :  { %v2131_v19 = vpop.f32.mrf.mxu1 }
 0x27e   :  { %v2132_v55 = vadd.f32 %v2131_v19, %v2091_v51 }
 0x27f   :  { %v2133_v56 = vpop.f32.mrf.mxu1 }
 0x280   :  { %v2138_v26 = vmul.f32 0.2, %v2132_v55  ;;  %v2134_v57 = vadd.f32 %v2133_v56, %v2093_v54 }
 0x281   :  { %v2135_v59 = vpop.f32.mrf.mxu1 }
 0x282   :  { %v2140_v60 = vmax.f32 %v2132_v55, %v2138_v26  ;;  %v2139_v61 = vmul.f32 0.2, %v2134_v57 }
 0x283   :  { %v2136_v63 = vpop.f32.mrf.mxu1 }
 0x284   :  { %v2141_v0 = vmax.f32 %v2134_v57, %v2139_v61  ;;  %v2154_v1 = vmul.f32 %v2147_v58, %v2140_v60 }
 0x286   :  { %v2155_v2 = vmul.f32 %v2151_v62, %v2141_v0  ;;  %v2157_v4 = vsel %vm2156_vm1, %v2154_v1, 0.0 }
 0x288   :  { %v2158_v5 = vsel %vm2156_vm1, %v2155_v2, 0.0 }
 0x289   :  { %v2159_v6 = vadd.f32 %v2158_v5, %v2157_v4 }
 0x28b   :  { %2160 = vadd.xlane.f32.xlu0 %v2159_v6 }
 0x314   :  { %v2161_v8 = vpop.xlane.xlu0 %2160 }
 0x315   :  { %v2164_v31 = vadd.f32 %v2163_v7, %v2161_v8 }
 0x317   :  { %v2442_v9 = vclamps-f32 %v2164_v31, 30.0 }
 0x319   :  { %v2167_v10 = vsub.f32 0.0, %v2442_v9 }
 0x31b   :  { %v2168_v11 = vmul.f32 1.442695, %v2167_v10 }
 0x31d   :  { %2844 = vpow2.f32 %v2168_v11 }
 0x32a   :  { %v2845_v52 = vpop.eup %2844 }
 0x32b   :  { %v2170_v12 = vadd.f32 1.0, %v2845_v52 }
 0x32d   :  { %2846 = vrcp.f32 %v2170_v12 }
 0x33a   :  { %v2847_v14 = vpop.eup %2846 }
 0x33b   :  { %2173 = vst.msk [vmem:[%s3053_s7] sm:$0x3] %vm2172_vm2, %v2847_v14 }
 0x33c   :  { %2178 = vsyncpa [#allocation4], 1 }
 0x33d   :  { %2179 = vsyncpa [#allocation6], 1 }

</bundles_post_ra>
